<compile_context>
chip_gen: v7x
topology: tpu7x:2x2x1
jax: 0.10.0
libtpu: 0.0.40
codegen_flags: <defaults>
</compile_context>

<pallas_src>
import math

import jax
import jax.numpy as jnp
from jax import lax
from jax.experimental import pallas as pl
from jax.experimental.pallas import tpu as pltpu

_LANE = 128


def _round_up(x, m):
    return ((x + m - 1) // m) * m


def _choose_tiles(N, C_out, K, L, itemsize, vmem_budget):
    """Pick lane tile TL (padded L) and contraction tile TK (padded K) under a VMEM budget."""
    # --- lane (output-spatial) tile: always lane-dense (multiple of 128). ---
    L_pad128 = _round_up(max(L, _LANE), _LANE)
    if L_pad128 >= 4 * _LANE:
        TL = 4 * _LANE
    elif L_pad128 >= 2 * _LANE:
        TL = 2 * _LANE
    else:
        TL = _LANE
    L_pad = _round_up(L_pad128, TL)
    # Keep >= 2 steps on the 'parallel' axes (v7x has two TensorCores per chip).
    while N * (L_pad // TL) < 2 and TL > _LANE:
        TL //= 2
        L_pad = _round_up(L_pad128, TL)

    def vmem_use(tk, resident_w):
        w_bufs = 1 if resident_w else 2            # Buffered(1) when weight is resident
        return (2 * tk * TL * itemsize             # patch tile (double-buffered)
                + w_bufs * C_out * tk * itemsize   # weight tile
                + 2 * C_out * TL * itemsize        # output tile (double-buffered)
                + C_out * TL * 4)                  # f32 accumulator scratch

    # --- contraction tile: whole K when it fits, else an even 128-multiple split. ---
    if vmem_use(K, True) <= vmem_budget:
        TK, K_pad = K, K
    else:
        TK = _round_up(K, _LANE)
        while TK > _LANE and vmem_use(TK, False) > vmem_budget:
            TK -= _LANE
        n_k = -(-K // TK)                          # even out the K tiles (minimise pad)
        TK = _round_up(-(-K // n_k), _LANE)
        K_pad = n_k * TK

    resident = (K_pad // TK) == 1
    return TL, L_pad, TK, K_pad, vmem_use(TK, resident)


def _make_kernel(scale):
    def kernel(w_ref, b_ref, p_ref, o_ref, acc_ref):
        # w_ref  : (C_out, TK)     un-scaled weight chunk (grid-resident when K fits)
        # b_ref  : (C_out, 1)      bias, grid-resident
        # p_ref  : (1, TK, TL)     im2col patch tile (lanes = flattened output spatial)
        # o_ref  : (1, C_out, TL)  lane-dense output tile (resident across the K axis)
        # acc_ref: (C_out, TL)     f32 accumulator scratch
        k = pl.program_id(2)

        @pl.when(k == 0)
        def _init():
            acc_ref[...] = jnp.zeros_like(acc_ref)

        # MXU matmul in the input dtype; accumulate in f32.
        acc_ref[...] += jnp.dot(w_ref[...], p_ref[0],
                                preferred_element_type=jnp.float32)

        @pl.when(k == pl.num_programs(2) - 1)
        def _finalize():
            # Equalized-LR scale folded into the small accumulator (not the weight):
            # one (C_out, TL) multiply per output tile instead of a (C_out, K) multiply
            # per grid step, and no f32 promotion of a bf16 weight before the dot.
            o_ref[0] = (acc_ref[...] * jnp.float32(scale)
                        + b_ref[...]).astype(o_ref.dtype)
    return kernel


def equal_conv2d(x, weight, bias, *, stride=1, padding=0,
                 vmem_budget_bytes=20 * 1024 * 1024):
    """EqualConv2d forward.  x: (N, C_in, H, W); weight: (C_out, C_in, KH, KW)."""
    N, C_in, H, W = x.shape
    C_out, C_in_w, KH, KW = weight.shape
    assert C_in == C_in_w
    scale = 1.0 / math.sqrt(C_in * KH * KW)

    H_out = (H + 2 * padding - KH) // stride + 1
    W_out = (W + 2 * padding - KW) // stride + 1
    L = H_out * W_out
    K = C_in * KH * KW

    # ---- glue (layout plumbing only): zero-pad + im2col in (c_in, kh, kw) order so it
    #      matches weight.reshape(C_out, C_in*KH*KW); output comes back NCHW-ordered.
    # TODO(synk): replace this HBM-materialized im2col with a tap-reduction grid axis /
    #             in-kernel halo gather for large StyleGAN layers (see header note).
    x_pad = jnp.pad(x, ((0, 0), (0, 0), (padding, padding), (padding, padding)))
    rows = []
    for kh in range(KH):
        cols = []
        for kw in range(KW):
            cols.append(lax.slice(
                x_pad,
                (0, 0, kh, kw),
                (N, C_in,
                 kh + (H_out - 1) * stride + 1,
                 kw + (W_out - 1) * stride + 1),
                (1, 1, stride, stride)))                   # (N, C_in, H_out, W_out)
        rows.append(jnp.stack(cols, axis=2))               # (N, C_in, KW, H_out, W_out)
    patches = jnp.stack(rows, axis=2)                      # (N, C_in, KH, KW, Ho, Wo)
    patches = patches.reshape(N, K, L)

    itemsize = jnp.dtype(x.dtype).itemsize
    TL, L_pad, TK, K_pad, vmem_use = _choose_tiles(
        N, C_out, K, L, itemsize, vmem_budget_bytes)

    if L_pad != L or K_pad != K:
        patches = jnp.pad(patches, ((0, 0), (0, K_pad - K), (0, L_pad - L)))

    # Kernel is dtype-preserving: pass bf16 x / weight to use the bf16 MXU path.
    w2d = weight.reshape(C_out, K).astype(x.dtype)
    if K_pad != K:
        w2d = jnp.pad(w2d, ((0, 0), (0, K_pad - K)))
    b = (bias if bias is not None
         else jnp.zeros((C_out,), x.dtype)).astype(x.dtype).reshape(C_out, 1)

    n_k_tiles = K_pad // TK
    weight_resident = n_k_tiles == 1

    # Resident (constant-index) weight/bias need no double buffer; only bother when the
    # weight block is large enough to matter so tiny layers keep the default pipeline.
    if weight_resident and C_out * K_pad * itemsize >= (1 << 20):
        w_spec = pl.BlockSpec((C_out, TK), lambda n, l, k: (0, 0),
                              pipeline_mode=pl.Buffered(1))
        b_spec = pl.BlockSpec((C_out, 1), lambda n, l, k: (0, 0),
                              pipeline_mode=pl.Buffered(1))
    else:
        w_spec = pl.BlockSpec((C_out, TK), lambda n, l, k: (0, k))
        b_spec = pl.BlockSpec((C_out, 1), lambda n, l, k: (0, 0))

    grid = (N, L_pad // TL, n_k_tiles)
    vmem_limit = min(max(vmem_use * 3 // 2, 16 * 1024 * 1024), 40 * 1024 * 1024)

    out_ncl = pl.pallas_call(
        _make_kernel(scale),
        out_shape=jax.ShapeDtypeStruct((N, C_out, L_pad), x.dtype),
        grid_spec=pltpu.PrefetchScalarGridSpec(
            num_scalar_prefetch=0,
            grid=grid,
            in_specs=[
                w_spec,                                                # weight chunk
                b_spec,                                                # bias (resident)
                pl.BlockSpec((1, TK, TL), lambda n, l, k: (n, k, l)),  # patches tile
            ],
            out_specs=pl.BlockSpec((1, C_out, TL), lambda n, l, k: (n, 0, l)),
            scratch_shapes=[pltpu.VMEM((C_out, TL), jnp.float32)],
        ),
        compiler_params=pltpu.CompilerParams(
            dimension_semantics=("parallel", "parallel", "arbitrary"),
            vmem_limit_bytes=int(vmem_limit)),
    )(w2d, b, patches)

    # glue: drop lane padding (padded lanes hold bias only — sliced off here), un-flatten.
    return out_ncl[:, :, :L].reshape(N, C_out, H_out, W_out)


def _reference(x, weight, bias, *, stride, padding):
    """Pure-JAX reference (mirrors F.conv2d with scaled weight)."""
    C_in = x.shape[1]
    KH, KW = weight.shape[2], weight.shape[3]
    scale = 1.0 / math.sqrt(C_in * KH * KW)
    out = lax.conv_general_dilated(
        x, weight * scale,
        window_strides=(stride, stride),
        padding=((padding, padding), (padding, padding)),
        dimension_numbers=("NCHW", "OIHW", "NCHW"),
    )
    if bias is not None:
        out = out + bias.reshape(1, -1, 1, 1)
    return out


if __name__ == "__main__":
    key = jax.random.PRNGKey(0)
    k_x, k_w, k_x3, k_w3, k_b3 = jax.random.split(key, 5)

    # Module config: EqualConv2d(in_channels=4, out_channels=8, kernel_size=3,
    #                            stride=1, padding=1, bias=True)
    N, C_in, H, W = 2, 4, 16, 16
    C_out, Ksz = 8, 3

    x = jax.random.normal(k_x, (N, C_in, H, W), dtype=jnp.float32)
    weight = jax.random.normal(k_w, (C_out, C_in, Ksz, Ksz), dtype=jnp.float32)
    bias = jnp.zeros((C_out,), dtype=jnp.float32)   # nn.Parameter(torch.zeros(out_channels))

    out = jax.block_until_ready(equal_conv2d(x, weight, bias, stride=1, padding=1))
    ref = _reference(x, weight, bias, stride=1, padding=1)
    assert out.shape == (N, C_out, H, W), out.shape
    assert jnp.allclose(out, ref, atol=1e-4, rtol=1e-4), \
        float(jnp.max(jnp.abs(out - ref)))

    # Exercise the stride>1 path (tile selection + output-lane padding).
    out2 = jax.block_until_ready(equal_conv2d(x, weight, bias, stride=2, padding=1))
    ref2 = _reference(x, weight, bias, stride=2, padding=1)
    assert jnp.allclose(out2, ref2, atol=1e-4, rtol=1e-4), \
        float(jnp.max(jnp.abs(out2 - ref2)))

    # Exercise the K-tiled accumulator path (forced via a tiny VMEM budget) and the
    # ">=2 parallel steps" TL halving for N=1, plus a non-zero bias.
    x3 = jax.random.normal(k_x3, (1, 32, 16, 16), dtype=jnp.float32)
    w3 = jax.random.normal(k_w3, (16, 32, 3, 3), dtype=jnp.float32)
    b3 = 0.1 * jax.random.normal(k_b3, (16,), dtype=jnp.float32)
    out3 = jax.block_until_ready(
        equal_conv2d(x3, w3, b3, stride=1, padding=1,
                     vmem_budget_bytes=256 * 1024))
    ref3 = _reference(x3, w3, b3, stride=1, padding=1)
    assert jnp.allclose(out3, ref3, atol=1e-3, rtol=1e-3), \
        float(jnp.max(jnp.abs(out3 - ref3)))

    print("KERNEL_OK")
</pallas_src>

<mosaic_0001>
module attributes {stable_mosaic.version = 11 : i64} {
  func.func @kernel(%arg0: i32, %arg1: i32, %arg2: i32, %arg3: memref<8x36xf32, #tpu.memory_space<vmem>>, %arg4: memref<8x1xf32, #tpu.memory_space<vmem>>, %arg5: memref<1x36x256xf32, #tpu.memory_space<vmem>>, %arg6: memref<1x8x256xf32, #tpu.memory_space<vmem>>, %arg7: memref<8x256xf32, #tpu.memory_space<vmem>>) attributes {dimension_semantics = [#tpu.dimension_semantics<parallel>, #tpu.dimension_semantics<parallel>, #tpu.dimension_semantics<arbitrary>], iteration_bounds = array<i64: 2, 1, 1>, scalar_prefetch = 0 : i64, scratch_operands = 1 : i64, tpu.core_type = #tpu.core_type<tc>, window_params = [{transform_indices = @transform_0, window_bounds = array<i64: 8, 36>}, {pipeline_mode = #tpu.pipeline_mode<synchronous>, transform_indices = @transform_1, window_bounds = array<i64: 8, 1>}, {transform_indices = @transform_2, window_bounds = array<i64: 1, 36, 256>}, {transform_indices = @transform_3, window_bounds = array<i64: 1, 8, 256>}]} {
    %c0_i32 = arith.constant 0 : i32
    %0 = arith.cmpi eq, %arg2, %c0_i32 : i32
    %1 = arith.extui %0 : i1 to i32
    %c0_i32_0 = arith.constant 0 : i32
    %2 = arith.cmpi ne, %1, %c0_i32_0 : i32
    scf.if %2 {
      %cst_11 = arith.constant 0.000000e+00 : f32
      %13 = vector.broadcast %cst_11 : f32 to vector<8x256xf32>
      %c0_12 = arith.constant 0 : index
      %c0_13 = arith.constant 0 : index
      %14 = vector.load %arg7[%c0_12, %c0_13] : memref<8x256xf32, #tpu.memory_space<vmem>>, vector<8x256xf32>
      tpu.vector_store %arg7[%c0_12, %c0_13], %13 {strides = array<i32>} : memref<8x256xf32, #tpu.memory_space<vmem>>, vector<8x256xf32>,
    } else {
    }
    %c0 = arith.constant 0 : index
    %c0_1 = arith.constant 0 : index
    %3 = vector.load %arg7[%c0, %c0_1] : memref<8x256xf32, #tpu.memory_space<vmem>>, vector<8x256xf32>
    %c0_2 = arith.constant 0 : index
    %c0_3 = arith.constant 0 : index
    %4 = vector.load %arg3[%c0_2, %c0_3] : memref<8x36xf32, #tpu.memory_space<vmem>>, vector<8x36xf32>
    %c0_4 = arith.constant 0 : index
    %c0_5 = arith.constant 0 : index
    %c0_6 = arith.constant 0 : index
    %5 = vector.load %arg5[%c0_4, %c0_5, %c0_6] : memref<1x36x256xf32, #tpu.memory_space<vmem>>, vector<1x36x256xf32>
    %6 = vector.shape_cast %5 : vector<1x36x256xf32> to vector<36x256xf32>
    %cst = arith.constant dense<0.000000e+00> : vector<8x256xf32>
    %7 = tpu.matmul %4, %6, %cst {dimension_numbers = #tpu.dot_dimension_numbers<[1], [0], [0], [1], [0, 0, 1, 1], [], []>} : vector<8x36xf32>, vector<36x256xf32>, vector<8x256xf32> -> vector<8x256xf32>
    %8 = arith.addf %3, %7 : vector<8x256xf32>
    %c0_7 = arith.constant 0 : index
    %c0_8 = arith.constant 0 : index
    %9 = vector.load %arg7[%c0_7, %c0_8] : memref<8x256xf32, #tpu.memory_space<vmem>>, vector<8x256xf32>
    tpu.vector_store %arg7[%c0_7, %c0_8], %8 {strides = array<i32>} : memref<8x256xf32, #tpu.memory_space<vmem>>, vector<8x256xf32>,
    %c0_i32_9 = arith.constant 0 : i32
    %10 = arith.cmpi eq, %arg2, %c0_i32_9 : i32
    %11 = arith.extui %10 : i1 to i32
    %c0_i32_10 = arith.constant 0 : i32
    %12 = arith.cmpi ne, %11, %c0_i32_10 : i32
    scf.if %12 {
      %c0_11 = arith.constant 0 : index
      %c0_12 = arith.constant 0 : index
      %13 = vector.load %arg7[%c0_11, %c0_12] : memref<8x256xf32, #tpu.memory_space<vmem>>, vector<8x256xf32>
      %cst_13 = arith.constant 0.166666672 : f32
      %14 = vector.broadcast %cst_13 : f32 to vector<8x256xf32>
      %15 = arith.mulf %13, %14 : vector<8x256xf32>
      %c0_14 = arith.constant 0 : index
      %c0_15 = arith.constant 0 : index
      %16 = vector.load %arg4[%c0_14, %c0_15] : memref<8x1xf32, #tpu.memory_space<vmem>>, vector<8x1xf32>
      %17 = vector.broadcast %16 : vector<8x1xf32> to vector<8x256xf32>
      %18 = arith.addf %15, %17 : vector<8x256xf32>
      %c0_16 = arith.constant 0 : index
      %c0_17 = arith.constant 0 : index
      %c0_18 = arith.constant 0 : index
      %19 = vector.load %arg6[%c0_16, %c0_17, %c0_18] : memref<1x8x256xf32, #tpu.memory_space<vmem>>, vector<1x8x256xf32>
      %20 = vector.shape_cast %19 : vector<1x8x256xf32> to vector<8x256xf32>
      %21 = vector.shape_cast %18 : vector<8x256xf32> to vector<1x8x256xf32>
      tpu.vector_store %arg6[%c0_16, %c0_17, %c0_18], %21 {strides = array<i32>} : memref<1x8x256xf32, #tpu.memory_space<vmem>>, vector<1x8x256xf32>,
    } else {
    }
    return
  }
  func.func @transform_0(%arg0: i32, %arg1: i32, %arg2: i32) -> (i32, i32) {
    %c0_i32 = arith.constant 0 : i32
    %c0_i32_0 = arith.constant 0 : i32
    return %c0_i32, %arg2 : i32, i32
  }
  func.func @transform_1(%arg0: i32, %arg1: i32, %arg2: i32) -> (i32, i32) {
    %c0_i32 = arith.constant 0 : i32
    %c0_i32_0 = arith.constant 0 : i32
    %c0_i32_1 = arith.constant 0 : i32
    return %c0_i32, %c0_i32_0 : i32, i32
  }
  func.func @transform_2(%arg0: i32, %arg1: i32, %arg2: i32) -> (i32, i32, i32) {
    %c0_i32 = arith.constant 0 : i32
    return %arg0, %arg2, %arg1 : i32, i32, i32
  }
  func.func @transform_3(%arg0: i32, %arg1: i32, %arg2: i32) -> (i32, i32, i32) {
    %c0_i32 = arith.constant 0 : i32
    %c0_i32_0 = arith.constant 0 : i32
    return %arg0, %c0_i32, %arg1 : i32, i32, i32
  }
}

</mosaic_0001>

<bundles_post_ra>
// kernel: tpu_custom_call.1
= control target key start
LH: loop header
LB: loop body
LE: loop exit
PB: predicated region body
PF: predicated region fallthrough
CT: control target
= control target key end

     0   :  { %8 = vsyncpa [#allocation4], 0  ;;  %s787_s0 = inlined_call_operand.vmem [shape: f32[8,36], index: 0, kind: input, shape index: {}]   ;;  %s788_s1 = inlined_call_operand.vmem [shape: f32[8,1], index: 1, kind: input, shape index: {}]   ;;  %s789_s2 = inlined_call_operand.vmem [shape: f32[2,36,256], index: 2, kind: input, shape index: {}]   ;;  %s790_s3 = inlined_call_operand.hbm [shape: f32[2,8,256], index: 3, kind: output, shape index: {}]  }
   0x1   :  { %10 = vsyncpa [#allocation4 + $0x1], 0  ;;  %s669_s12 = smov 0   ;;  %s671_s13 = smov 0  }
   0x2   :  { %s673_s14 = smov 0   ;;  %s675_s15 = smov 0  }
   0x3   :  { %s677_s16 = smov 0   ;;  %s679_s17 = smov 0  }
   0x4 LB: > { %s482_s18 = sadd.s32 4294967295, %s644_s17   ;;  %s483_s19 = sadd.s32 4294967294, %s644_s17   ;;  %s644_s17 = sphi %s679_s17, %s16_s17   ;;  %s640_s16 = sphi %s677_s16, %s797_s16   ;;  %s636_s15 = sphi %s675_s15, %s796_s15   ;;  %s632_s14 = sphi %s673_s14, %s795_s14   ;;  %s628_s13 = sphi %s671_s13, %s794_s13   ;;  %s624_s12 = sphi %s669_s12, %s793_s12  }
   0x5   : > { %s35_s20 = sadd.s32 1, %s640_s16  ;;  %s121_s21 = sadd.s32 1, %s632_s14 }
   0x6   : > { %p37_p0 = scmp.ge.s32.totalorder %s35_s20, 2  ;;  %p131_p1 = scmp.ne.s32.totalorder %s632_s14, %s628_s13 }
   0x7   : > { %p132_p2 = scmp.eq.s32.totalorder %s482_s18, 1  ;;  %p137_p3 = scmp.ne.s32.totalorder %s628_s13, %s624_s12 }
   0x8   : > { %s799_s20 = smov (%p37_p0, %s35_s20), 0  ;;  %p138_p5 = scmp.eq.s32.totalorder %s483_s19, 1 }
   0x9   : > { %p709_p4 = por %p132_p2, %p131_p1  ;;  %s116_s23 = ssub.s32 %s640_s16, %s799_s20 }
   0xa   : > { %p487_p6 = scmp.ge.s32.totalorder %s644_s17, 1  ;;  %p119_p7 = scmp.eq.s32.totalorder %s116_s23, 0 }
   0xb   : > { %p716_p8 = por %p138_p5, %p137_p3  ;;  %p185_p9 = scmp.lt.s32.totalorder %s644_s17, 3 }
   0xc   : > { %s722_s25 = scalar_select %p119_p7, %s632_s14, %s121_s21  }
   0xd   : > { %p186_p10 = pnand %p487_p6, %p185_p9 }
   0xe   : > { %p228_p11 = scmp.lt.s32.totalorder (!%p186_p10), %s636_s15, 1  ;;  %v646_v0 = vmov (!%p186_p10), 0.0   ;;  %v647_v1 = vmov (!%p186_p10), 0   ;;  %v355_v2 = vld [vmem:[%s788_s1] sm:$0xff] (!%p186_p10)  ;;  %vm266_vm0 = vcmask (!%p186_p10), 1043456   ;;  %vm262_vm1 = vcmask (!%p186_p10), 293888  }
   0xf   : > { %189 = sbr.rel (%p186_p10) target bundleno = 271 (0x10f), region = 32  ;;  %337 = vmatprep.mubr.f32.mxu0 (!%p186_p10), %v646_v0  ;;  %565 = vset.pattern.permute.xlu0 (!%p186_p10), %v647_v1  ;;  %v251_v17 = vld [vmem:[%s787_s0] sm:$0xff] (!%p186_p10)  ;;  %s219_s8 = sand.u32 (!%p186_p10), 1, %s628_s13  }
  0x10   : > { %358 = vperm.xlu0 (!%p186_p10), %565, %v355_v2   ;;  %s488_s9 = sshll.u32 (!%p186_p10), %s219_s8, 4  ;;  %s498_s10 = sshll.u32 (!%p186_p10), %s636_s15, 8 }
  0x11   : > { %s221_s11 = scalar_lea.vmem (!%p186_p10), [#allocation3], %s488_s9  ;;  %s740_s23 = scalar_lea.hbm (!%p186_p10), %s790_s3, %s498_s10 }
  0x12   : > { %s382_s18 = sshll.u32 (!%p186_p10), %s221_s11, 4  ;;  %s366_s26 = scalar_lea.sflag (!%p186_p10), [#allocation4], %s219_s8  ;;  %s742_s18 = int_to_ptr.vmem [resolvable:$true] %s382_s18 }
  0x13   : > { %s566_s27 = scalar_lea.vmem (!%p186_p10), %s742_s18, 256 }
  0x14   : > { %p567_p12 = scmp.ne.s32.totalorder (!%p186_p10), %s742_s18, %s566_s27 }
  0x16   : > { %s229_s28 = scalar_select %p228_p11, %s636_s15, 1 }
  0x17   : > { %p568_p13 = pnand %p567_p12, %p709_p4  ;;  %s648_s15 = smov [#allocation3]  }
  0x18   : > { %s507_s29 = smul.u32 80, %s229_s28  ;;  %s570_s28 = sshll.u32 %s648_s15, 4  ;;  %s571_s28 = int_to_ptr.vmem [resolvable:$false] %s570_s28 }
  0x19   : > { %p569_p0 = pneg %p568_p13  ;;  %p573_p1 = scmp.lt.s32.totalorder %s742_s18, %s571_s28 }
  0x1a   : > { %s239_s5 = scalar_lea.vmem %s789_s2, %s507_s29  ;;  %s572_s29 = scalar_lea.vmem %s571_s28, 512 }
  0x1b   : > { %v253_v3 = vld [vmem:[%s239_s5 + $0x8] sm:$0xff]  ;;  %v255_v4 = vld [vmem:[%s239_s5 + $0x18] sm:$0xff]  ;;  %v252_v5 = vld [vmem:[%s239_s5] sm:$0xff]  ;;  %p574_p2 = scmp.lt.s32.totalorder %s572_s29, %s566_s27 }
  0x1c   : > { %v499_v6 = vpack.c.bf16 %v255_v4, %v253_v3  ;;  %v254_v7 = vld [vmem:[%s239_s5 + $0x10] sm:$0xff]  ;;  %v257_v8 = vld [vmem:[%s239_s5 + $0x28] sm:$0xff]  ;;  %v259_v9 = vld [vmem:[%s239_s5 + $0x38] sm:$0xff] }
  0x1d   : > { %v501_v10 = vpack.c.bf16 %v254_v7, %v252_v5  ;;  %v503_v11 = vpack.c.bf16 %v259_v9, %v257_v8  ;;  %v256_v12 = vld [vmem:[%s239_s5 + $0x20] sm:$0xff]  ;;  %v258_v13 = vld [vmem:[%s239_s5 + $0x30] sm:$0xff]  ;;  %v261_v15 = vld [vmem:[%s239_s5 + $0x48] sm:$0xf]  ;;  %p575_p3 = por %p574_p2, %p573_p1 }
  0x1e   : > { %500 = vmatprep.subr.bf16.mxu0 %v499_v6  ;;  %v505_v14 = vpack.c.bf16 %v258_v13, %v256_v12  ;;  %v260_v16 = vld [vmem:[%s239_s5 + $0x40] sm:$0xf] }
  0x1f   : > { %502 = vmatpush1.bf16.msra.mxu0 %v501_v10  ;;  %p576_p5 = pnand %p575_p3, %p569_p0 }
  0x20   : > { %504 = vmatprep.subr.bf16.mxu0 %v503_v11 }
  0x23   : > { %506 = vmatpush1.bf16.msra.mxu0 %v505_v14 }
  0x24   : > { %490 = vmatprep.subr.msk.mxu0 %vm266_vm0, %v261_v15 }
  0x27   : > { %491 = vmatpush1.msk.msra.mxu0 %vm266_vm0, %v260_v16 }
  0x28   : > { %492 = vmatmul.mubr.msk.f32.vlgmr.msra.gmra.mrb[0].mxu0 %vm262_vm1, %v251_v17 }
  0x8f   : > { %v359_v19 = vpop.permute.xlu0 %358 }
  0xfb   : > { %v339_v18 = vpop.f32.mrb[0].mxu0 }
  0xfc   : > { %v353_v20 = vmul.f32 0.16666667, %v339_v18  ;;  %v341_v21 = vpop.f32.mrb[1].mxu0 }
  0xfd   : > { %v354_v22 = vmul.f32 0.16666667, %v341_v21 }
  0xfe   : > { %v361_v23 = vadd.f32 %v359_v19, %v353_v20 }
  0xff   : > { %v362_v24 = vadd.f32 %v359_v19, %v354_v22 }
 0x100   : > { %363 = vst [vmem:[%s221_s11] sm:$0xff] %v361_v23 }
 0x101   : > { %364 = vst [vmem:[%s221_s11 + $0x8] sm:$0xff] %v362_v24 }
 0x102   : > { %579 = shalt.err (!%p576_p5)
}
 0x103   : > { %s580_s30 = scalar_lea.hbm %s740_s23, 256  ;;  %s584_s6 = scalar_lea.hbm %s790_s3, 512 }
 0x104   : > { %p581_p6 = scmp.ne.s32.totalorder %s740_s23, %s580_s30  ;;  %p585_p10 = scmp.lt.u32.totalorder %s740_s23, %s790_s3 }
 0x105   : > { %p586_p11 = scmp.lt.u32.totalorder %s584_s6, %s580_s30  ;;  %p588_p13 = scmp.lt.u32.totalorder %s580_s30, %s740_s23 }
 0x106   : > { %p582_p7 = pnand %p581_p6, %p709_p4 }
 0x107   : > { %p587_p12 = por %p586_p11, %p585_p10 }
 0x108   : > { %p583_p9 = pneg %p582_p7 }
 0x109   : > { %p589_p0 = por %p588_p13, %p587_p12 }
 0x10b   : > { %p590_p1 = pnand %p589_p0, %p583_p9 }
 0x10d   : > { %593 = shalt.err (!%p590_p1)
}
 0x10e   : > { %508 = dma.vmem_to_hbm [thread:$0]  (%p709_p4), %s742_s18, 256, %s740_s23, %s366_s26  }
 0x10f PF: > { %p514_p2 = scmp.ge.s32.totalorder %s644_s17, 2  ;;  %s394_s9 = sand.u32 1, %s624_s12  }
 0x110   : > { %s395_s10 = scalar_lea.sflag [#allocation4], %s394_s9 }
 0x111   : > { %p511_p3 = pnand %p514_p2, %p716_p8 }
 0x113   : > { %619 = dma.done.wait (!%p511_p3), %s395_s10, 256  }
 0x114   : > { %621 = vsyncadd (!%p511_p3), %s395_s10, 4294967040  ;;  %s16_s17 = sadd.s32 1, %s644_s17   ;;  %s793_s12 = smov %s628_s13 }
 0x115   : > { %p13_p5 = scmp.ge.s32.totalorder %s16_s17, 4   ;;  %s794_s13 = smov %s632_s14 }
 0x116   : > { %s795_s14 = smov %s722_s25  ;;  %s796_s15 = smov %s640_s16 }
 0x117   : > { %s797_s16 = smov %s799_s20  ;;  %15 = sbr.rel (!%p13_p5) target bundleno = 4 (0x4), region = 78 }
 0x11e   :  { %400 = vsyncpa [#allocation4], 1 }
 0x11f   :  { %402 = vsyncpa [#allocation4 + $0x1], 1 }

</bundles_post_ra>
